<compile_context>
chip_gen: v7x
topology: tpu7x:2x2x1
jax: 0.10.0
libtpu: 0.0.40
codegen_flags: <defaults>
</compile_context>

<pallas_src>
import jax
import jax.numpy as jnp
from jax.experimental import pallas as pl
from jax.experimental.pallas import tpu as pltpu


def _round_up(v, m):
    return (v + m - 1) // m * m


def _choose_row_tile(n, granule=8, tn_max=1024, min_grid_steps=4):
    """Largest row tile <= tn_max that still leaves >= min_grid_steps grid
    steps (keeps both v7x TensorCores busy), rounded to the sublane granule."""
    if n <= granule:
        return n  # one block covering the (tiny) full array
    tn = _round_up(pl.cdiv(n, min_grid_steps), granule)
    tn = min(tn, tn_max, _round_up(n, granule))
    return max(tn, granule)


def _head_kernel(x_ref, m_ref, wx_ref, wm_ref, b_ref, out_ref):
    # Split-weight accumulation replaces torch.cat along the feature axis:
    #   [x | meta] @ W  ==  x @ W[:dx] + meta @ W[dx:]
    # Activations are cast to the (possibly bf16) weight dtype on-chip so the
    # MXU runs its native bf16 path; accumulation stays f32.
    wdt = wx_ref.dtype
    acc = jnp.dot(x_ref[...].astype(wdt), wx_ref[...],
                  preferred_element_type=jnp.float32)
    acc = acc + jnp.dot(m_ref[...].astype(wdt), wm_ref[...],
                        preferred_element_type=jnp.float32)
    # TODO(synk): if the producer can hand x|meta pre-concatenated, a single
    # K=dx+dm dot would halve MXU pushes; not worth an HBM-level concat here.
    out_ref[...] = (acc + b_ref[...]).astype(out_ref.dtype)


def prepare_classification_head_params(w_cls, b_cls, w_bbox, b_bbox, dx, *,
                                        param_dtype=jnp.bfloat16):
    """Fuse + transpose + pad + cast the two Linear layers ONCE (static weights).

    w_cls:  (num_classes+1, input_size)           b_cls:  (num_classes+1,)
    w_bbox: (num_bbox_reg_classes*B, input_size)  b_bbox: (...,)
    dx: number of input features coming from the flattened ROI features
        (the remaining input_size - dx rows are consumed by meta_features).

    Returns (wx, wm, b2, kc, kb, k_pad):
      wx : (dx, k_pad) fused weight rows for the ROI features  (param_dtype)
      wm : (dm, k_pad) fused weight rows for the meta features (param_dtype)
      b2 : (1, k_pad)  fused bias row (f32)
    """
    w_cls = jnp.asarray(w_cls)
    w_bbox = jnp.asarray(w_bbox)
    kc = w_cls.shape[0]
    kb = w_bbox.shape[0]

    # (input_size, kc+kb) fused weight; pad output axis to a 128-lane multiple
    # so the kernel's output stores are unmasked full-lane vst.
    w_fused = jnp.concatenate([w_cls.T, w_bbox.T], axis=1)
    b_fused = jnp.concatenate(
        [jnp.asarray(b_cls), jnp.asarray(b_bbox)], axis=0).astype(jnp.float32)
    k_pad = _round_up(kc + kb, 128)
    if k_pad != kc + kb:
        w_fused = jnp.pad(w_fused, ((0, 0), (0, k_pad - (kc + kb))))
        b_fused = jnp.pad(b_fused, (0, k_pad - (kc + kb)))

    w_fused = w_fused.astype(param_dtype)
    wx = w_fused[:dx]
    wm = w_fused[dx:]
    b2 = b_fused.reshape(1, k_pad)
    return wx, wm, b2, kc, kb, k_pad


def classification_output_layers_forward(x, meta_features, params, *,
                                         out_dtype=None,
                                         return_fused_slab=False):
    """x: (N, C, H, W) or (N, dx); meta_features: (N, dm).

    params: output of prepare_classification_head_params.
    Returns (scores (N, K+1), proposal_deltas (N, K*B)) in out_dtype
    (default x.dtype), or (fused_slab (N, k_pad), kc, kb) when
    return_fused_slab=True so consumers can fuse the lane slices.
    """
    wx, wm, b2, kc, kb, k_pad = params

    if x.ndim > 2:
        x = x.reshape(x.shape[0], -1)        # torch.flatten(x, start_dim=1)
    n = x.shape[0]
    dx = x.shape[1]
    dm = meta_features.shape[1]
    assert wx.shape[0] == dx and wm.shape[0] == dm
    if out_dtype is None:
        out_dtype = x.dtype

    # Row tiling: big tiles (kernel was step-overhead bound at 256), but keep
    # >=4 grid steps when N allows so both v7x TensorCores get work. The
    # ragged last block is handled by the cdiv grid: no wrapper-side jnp.pad,
    # no padded output rows in HBM (output writeback of the partial block is
    # masked by Pallas).
    tn = _choose_row_tile(n)
    grid = (pl.cdiv(n, tn),)

    act_bytes = x.dtype.itemsize
    w_bytes = wx.dtype.itemsize
    out_bytes = jnp.dtype(out_dtype).itemsize
    cost = pl.CostEstimate(
        flops=2 * n * (dx + dm) * k_pad,
        transcendentals=0,
        bytes_accessed=(act_bytes * n * (dx + dm)      # x + meta streams
                        + w_bytes * (dx + dm) * k_pad  # fused weights
                        + 4 * k_pad                    # bias row
                        + out_bytes * n * k_pad),      # fused output slab
    )

    # NOTE: wx/wm/b2 have constant index_maps so they are fetched once and
    # stay VMEM-resident; at realistic head widths consider
    # pipeline_mode=pl.Buffered(1) on them to drop the second buffer.
    fused = pl.pallas_call(
        _head_kernel,
        out_shape=jax.ShapeDtypeStruct((n, k_pad), out_dtype),
        grid=grid,
        in_specs=[
            pl.BlockSpec((tn, dx), lambda i: (i, 0)),     # x tile
            pl.BlockSpec((tn, dm), lambda i: (i, 0)),     # meta tile
            pl.BlockSpec((dx, k_pad), lambda i: (0, 0)),  # weights: resident
            pl.BlockSpec((dm, k_pad), lambda i: (0, 0)),
            pl.BlockSpec((1, k_pad), lambda i: (0, 0)),   # fused bias row
        ],
        out_specs=pl.BlockSpec((tn, k_pad), lambda i: (i, 0)),
        compiler_params=pltpu.CompilerParams(
            dimension_semantics=("parallel",)),           # megacore on v7x
        cost_estimate=cost,
    )(x, meta_features, wx, wm, b2)

    if return_fused_slab:
        return fused, kc, kb
    scores = fused[:, :kc]
    deltas = fused[:, kc:kc + kb]
    return scores, deltas


if __name__ == "__main__":
    key = jax.random.PRNGKey(0)

    # Small shapes consistent with the module:
    #   input_shape: channels=16, height=2, width=2 -> flattened dx = 64
    #   input_size = dx * 2 = 128 (meta_features supplies the other 64)
    # N = 10 deliberately NOT a multiple of the row tile to exercise the
    # ragged-last-block path (no wrapper-side padding).
    N = 10
    C, H, W = 16, 2, 2
    num_classes = 10
    cls_agnostic_bbox_reg = False
    box_dim = 4                                  # len(Box2BoxTransform.weights)
    num_bbox_reg_classes = 1 if cls_agnostic_bbox_reg else num_classes

    dx = C * H * W                               # 64
    dm = dx                                      # input_size *= 2 => meta half
    input_size = dx + dm                         # 128

    k_x, k_m, k_wc, k_wb = jax.random.split(key, 4)
    x = jax.random.normal(k_x, (N, C, H, W), dtype=jnp.float32)
    meta_features = jax.random.normal(k_m, (N, dm), dtype=jnp.float32)

    # Deterministic parameter init mirroring the module's __init__:
    #   nn.init.normal_(cls_score.weight, std=0.01); bbox_pred std=0.001; biases 0.
    w_cls = 0.01 * jax.random.normal(k_wc, (num_classes + 1, input_size),
                                     dtype=jnp.float32)
    b_cls = jnp.zeros((num_classes + 1,), dtype=jnp.float32)
    w_bbox = 0.001 * jax.random.normal(
        k_wb, (num_bbox_reg_classes * box_dim, input_size), dtype=jnp.float32)
    b_bbox = jnp.zeros((num_bbox_reg_classes * box_dim,), dtype=jnp.float32)

    # Pure-JAX reference (mirrors the PyTorch forward).
    x_flat = x.reshape(N, -1)
    x_cat = jnp.concatenate([x_flat, meta_features], axis=-1)
    scores_ref = x_cat @ w_cls.T + b_cls
    deltas_ref = x_cat @ w_bbox.T + b_bbox

    # --- 1) f32 params, f32 output: exact-path correctness check. ---
    params_f32 = prepare_classification_head_params(
        w_cls, b_cls, w_bbox, b_bbox, dx, param_dtype=jnp.float32)
    scores32, deltas32 = classification_output_layers_forward(
        x, meta_features, params_f32)
    jax.block_until_ready((scores32, deltas32))
    assert scores32.shape == (N, num_classes + 1)
    assert deltas32.shape == (N, num_bbox_reg_classes * box_dim)
    assert jnp.allclose(scores32, scores_ref, atol=1e-5, rtol=1e-5)
    assert jnp.allclose(deltas32, deltas_ref, atol=1e-5, rtol=1e-5)

    # --- 2) bf16 params + bf16 output: review-recommended inference path. ---
    params_bf16 = prepare_classification_head_params(
        w_cls, b_cls, w_bbox, b_bbox, dx)        # default param_dtype=bf16
    scores16, deltas16 = classification_output_layers_forward(
        x, meta_features, params_bf16, out_dtype=jnp.bfloat16)
    jax.block_until_ready((scores16, deltas16))
    assert scores16.dtype == jnp.bfloat16 and deltas16.dtype == jnp.bfloat16
    assert jnp.allclose(scores16.astype(jnp.float32), scores_ref,
                        atol=5e-3, rtol=3e-2)
    assert jnp.allclose(deltas16.astype(jnp.float32), deltas_ref,
                        atol=5e-3, rtol=3e-2)

    # TODO(synk): losses() (cross-entropy / smooth-L1 over dynamic fg indices)
    # and inference()/hierarchical_inference (dynamic-shape filtering + NMS)
    # are not part of forward() and are not implemented as Pallas kernels.
    print("KERNEL_OK")
</pallas_src>

<mosaic_0001>
module attributes {stable_mosaic.version = 11 : i64} {
  func.func @_head_kernel(%arg0: i32, %arg1: memref<8x64xf32, #tpu.memory_space<vmem>>, %arg2: memref<8x64xf32, #tpu.memory_space<vmem>>, %arg3: memref<64x128xf32, #tpu.memory_space<vmem>>, %arg4: memref<64x128xf32, #tpu.memory_space<vmem>>, %arg5: memref<1x128xf32, #tpu.memory_space<vmem>>, %arg6: memref<8x128xf32, #tpu.memory_space<vmem>>) attributes {dimension_semantics = [#tpu.dimension_semantics<parallel>], iteration_bounds = array<i64: 2>, scalar_prefetch = 0 : i64, scratch_operands = 0 : i64, tpu.core_type = #tpu.core_type<tc>, window_params = [{transform_indices = @transform_0, window_bounds = array<i64: 8, 64>}, {transform_indices = @transform_1, window_bounds = array<i64: 8, 64>}, {pipeline_mode = #tpu.pipeline_mode<synchronous>, transform_indices = @transform_2, window_bounds = array<i64: 64, 128>}, {pipeline_mode = #tpu.pipeline_mode<synchronous>, transform_indices = @transform_3, window_bounds = array<i64: 64, 128>}, {pipeline_mode = #tpu.pipeline_mode<synchronous>, transform_indices = @transform_4, window_bounds = array<i64: 1, 128>}, {transform_indices = @transform_5, window_bounds = array<i64: 8, 128>}]} {
    %c0 = arith.constant 0 : index
    %c0_0 = arith.constant 0 : index
    %0 = vector.load %arg1[%c0, %c0_0] : memref<8x64xf32, #tpu.memory_space<vmem>>, vector<8x64xf32>
    %c0_1 = arith.constant 0 : index
    %c0_2 = arith.constant 0 : index
    %1 = vector.load %arg3[%c0_1, %c0_2] : memref<64x128xf32, #tpu.memory_space<vmem>>, vector<64x128xf32>
    %cst = arith.constant dense<0.000000e+00> : vector<8x128xf32>
    %2 = tpu.matmul %0, %1, %cst {dimension_numbers = #tpu.dot_dimension_numbers<[1], [0], [0], [1], [0, 0, 1, 1], [], []>} : vector<8x64xf32>, vector<64x128xf32>, vector<8x128xf32> -> vector<8x128xf32>
    %c0_3 = arith.constant 0 : index
    %c0_4 = arith.constant 0 : index
    %3 = vector.load %arg2[%c0_3, %c0_4] : memref<8x64xf32, #tpu.memory_space<vmem>>, vector<8x64xf32>
    %c0_5 = arith.constant 0 : index
    %c0_6 = arith.constant 0 : index
    %4 = vector.load %arg4[%c0_5, %c0_6] : memref<64x128xf32, #tpu.memory_space<vmem>>, vector<64x128xf32>
    %cst_7 = arith.constant dense<0.000000e+00> : vector<8x128xf32>
    %5 = tpu.matmul %3, %4, %cst_7 {dimension_numbers = #tpu.dot_dimension_numbers<[1], [0], [0], [1], [0, 0, 1, 1], [], []>} : vector<8x64xf32>, vector<64x128xf32>, vector<8x128xf32> -> vector<8x128xf32>
    %6 = arith.addf %2, %5 : vector<8x128xf32>
    %c0_8 = arith.constant 0 : index
    %c0_9 = arith.constant 0 : index
    %7 = vector.load %arg5[%c0_8, %c0_9] : memref<1x128xf32, #tpu.memory_space<vmem>>, vector<1x128xf32>
    %8 = vector.broadcast %7 : vector<1x128xf32> to vector<8x128xf32>
    %9 = arith.addf %6, %8 : vector<8x128xf32>
    %c0_10 = arith.constant 0 : index
    %c0_11 = arith.constant 0 : index
    %10 = vector.load %arg6[%c0_10, %c0_11] : memref<8x128xf32, #tpu.memory_space<vmem>>, vector<8x128xf32>
    tpu.vector_store %arg6[%c0_10, %c0_11], %9 {strides = array<i32>} : memref<8x128xf32, #tpu.memory_space<vmem>>, vector<8x128xf32>,
    return
  }
  func.func @transform_0(%arg0: i32) -> (i32, i32) {
    %c0_i32 = arith.constant 0 : i32
    %c0_i32_0 = arith.constant 0 : i32
    return %arg0, %c0_i32 : i32, i32
  }
  func.func @transform_1(%arg0: i32) -> (i32, i32) {
    %c0_i32 = arith.constant 0 : i32
    %c0_i32_0 = arith.constant 0 : i32
    return %arg0, %c0_i32 : i32, i32
  }
  func.func @transform_2(%arg0: i32) -> (i32, i32) {
    %c0_i32 = arith.constant 0 : i32
    %c0_i32_0 = arith.constant 0 : i32
    %c0_i32_1 = arith.constant 0 : i32
    return %c0_i32, %c0_i32_0 : i32, i32
  }
  func.func @transform_3(%arg0: i32) -> (i32, i32) {
    %c0_i32 = arith.constant 0 : i32
    %c0_i32_0 = arith.constant 0 : i32
    %c0_i32_1 = arith.constant 0 : i32
    return %c0_i32, %c0_i32_0 : i32, i32
  }
  func.func @transform_4(%arg0: i32) -> (i32, i32) {
    %c0_i32 = arith.constant 0 : i32
    %c0_i32_0 = arith.constant 0 : i32
    %c0_i32_1 = arith.constant 0 : i32
    return %c0_i32, %c0_i32_0 : i32, i32
  }
  func.func @transform_5(%arg0: i32) -> (i32, i32) {
    %c0_i32 = arith.constant 0 : i32
    %c0_i32_0 = arith.constant 0 : i32
    return %arg0, %c0_i32 : i32, i32
  }
}

</mosaic_0001>

<bundles_post_ra>
// kernel: tpu_custom_call.1
= control target key start
LH: loop header
LB: loop body
LE: loop exit
PB: predicated region body
PF: predicated region fallthrough
CT: control target
= control target key end

     0   :  { %s1302_s0 = inlined_call_operand.hbm [shape: f32[10,64], index: 0, kind: input, shape index: {}]   ;;  %s1303_s1 = inlined_call_operand.hbm [shape: f32[10,64], index: 1, kind: input, shape index: {}]   ;;  %s1304_s2 = inlined_call_operand.hbm [shape: f32[64,128], index: 2, kind: input, shape index: {}]   ;;  %s1305_s3 = inlined_call_operand.hbm [shape: f32[64,128], index: 3, kind: input, shape index: {}]   ;;  %s1306_s4 = inlined_call_operand.vmem [shape: f32[1,128], index: 4, kind: input, shape index: {}]   ;;  %s1307_s5 = inlined_call_operand.hbm [shape: f32[10,128], index: 5, kind: output, shape index: {}]  }
   0x1   :  { %1312 = sst [smem:[#allocation16_spill]] %s1304_s2 }
   0x2   :  { %1313 = sst [smem:[#allocation17_spill]] %s1305_s3 }
   0x3   :  { %10 = vsyncpa [#allocation3], 0 }
   0x4   :  { %12 = vsyncpa [#allocation3 + $0x1], 0 }
   0x5   :  { %13 = vsyncpa [#allocation6], 0 }
   0x6   :  { %15 = vsyncpa [#allocation6 + $0x1], 0 }
   0x7   :  { %16 = vsyncpa [#allocation9], 0 }
   0x8   :  { %17 = vsyncpa [#allocation4], 0 }
   0x9   :  { %19 = vsyncpa [#allocation4 + $0x1], 0  ;;  %s1021_s18 = smov 0   ;;  %s1023_s19 = smov 0  }
   0xa   :  { %s1025_s20 = smov 0   ;;  %s1027_s21 = smov 0  }
   0xb LB: > { %s1042_s22 = sadd.s32 4294967295, %s979_s21   ;;  %s606_s23 = sadd.s32 4294967294, %s979_s21   ;;  %s979_s21 = sphi %s1027_s21, %s1335_s21   ;;  %s975_s20 = sphi %s1025_s20, %s1334_s20   ;;  %s971_s19 = sphi %s1023_s19, %s1333_s19   ;;  %s967_s18 = sphi %s1021_s18, %s1332_s18  }
   0xc   : > { %p45_p0 = scmp.ne.s32.totalorder %s971_s19, %s967_s18  ;;  %p1308_p1 = scmp.eq.s32.totalorder %s1042_s22, 0 }
   0xd   : > { %p164_p3 = scmp.eq.s32.totalorder %s606_s23, 1  ;;  %p607_p5 = scmp.ge.s32.totalorder %s979_s21, 1 }
   0xe   : > { %p1051_p4 = por %p1308_p1, %p45_p0  ;;  %p171_p7 = scmp.lt.s32.totalorder %s979_s21, 3 }
   0xf   : > { %p1056_p6 = por %p164_p3, %p45_p0  ;;  %s981_s27 = smov [#allocation7]  }
  0x10   : > { %s1314_s24 = scalar_select %p1051_p4, 1, 0 }
  0x11   : > { %s1315_s25 = scalar_select %p1056_p6, 1, 0 }
  0x12   : > { %p1061_p8 = pnand %p607_p5, %p171_p7  ;;  %s183_s28 = sshll.u32 %s981_s27, 4  ;;  %s1065_s28 = int_to_ptr.vmem [resolvable:$true] %s183_s28 }
  0x13   : > { %s982_s30 = smov [#allocation8]   ;;  %s1318_s2 = sld [smem:[#allocation16_spill]] }
  0x14   : > { %s1316_s26 = scalar_select %p1061_p8, 1, 0 }
  0x15   : > { %p722_p9 = pneg %p1061_p8  ;;  %s196_s6 = sshll.u32 %s982_s30, 4  ;;  %s1076_s6 = int_to_ptr.vmem [resolvable:$true] %s196_s6 }
  0x17   : > { %p1072_p11 = pnand %p722_p9, %p1308_p1 }
  0x19   : > { %s785_s9 = scalar_lea.hbm %s1318_s2, 1024  ;;  %p787_p13 = pneg %p1072_p11 }
  0x1a   : > { %p786_p12 = scmp.ne.s32.totalorder %s1318_s2, %s785_s9  ;;  %p792_p5 = scmp.lt.u32.totalorder %s785_s9, %s1318_s2 }
  0x1c   : > { %p788_p0 = pnand %p787_p13, %p786_p12 }
  0x1e   : > { %p789_p3 = pneg %p788_p0 }
  0x20   : > { %p794_p7 = pnand %p792_p5, %p789_p3 }
  0x22   : > { %797 = shalt.err (!%p794_p7)
}
  0x23   : > { %s798_s14 = scalar_lea.vmem %s1065_s28, 1024  ;;  %p806_p2 = scmp.lt.s32.totalorder %s1065_s28, %s1065_s28 }
  0x24   : > { %p799_p9 = scmp.ne.s32.totalorder %s1065_s28, %s798_s14  ;;  %p807_p12 = scmp.lt.s32.totalorder %s798_s14, %s798_s14 }
  0x26   : > { %p801_p10 = pnand %p799_p9, %p787_p13  ;;  %p808_p0 = por %p807_p12, %p806_p2 }
  0x28   : > { %p802_p1 = pneg %p801_p10 }
  0x2a   : > { %p809_p6 = pnand %p808_p0, %p802_p1 }
  0x2c   : > { %812 = shalt.err (!%p809_p6)
}
  0x2d   : > { %s983_s15 = smov 128   ;;  %s984_s16 = smov 8  }
  0x2e   : > { %725 = dma.hbm_to_vmem [thread:$0]  (!%p1072_p11), %s1318_s2, 1024, %s1065_s28, [#allocation6], %s983_s15, %s983_s15, %s984_s16  }
  0x2f   : > { %s1319_s3 = sld [smem:[#allocation17_spill]] }
  0x35   : > { %s813_s7 = scalar_lea.hbm %s1319_s3, 1024 }
  0x36   : > { %p814_p2 = scmp.ne.s32.totalorder %s1319_s3, %s813_s7  ;;  %p820_p10 = scmp.lt.u32.totalorder %s813_s7, %s1319_s3 }
  0x38   : > { %p816_p1 = pnand %p814_p2, %p787_p13 }
  0x3a   : > { %p817_p6 = pneg %p816_p1 }
  0x3c   : > { %p822_p3 = pnand %p820_p10, %p817_p6 }
  0x3e   : > { %825 = shalt.err (!%p822_p3)
}
  0x3f   : > { %s826_s28 = scalar_lea.vmem %s1076_s6, 1024  ;;  %p834_p12 = scmp.lt.s32.totalorder %s1076_s6, %s1076_s6 }
  0x40   : > { %p827_p5 = scmp.ne.s32.totalorder %s1076_s6, %s826_s28  ;;  %p835_p0 = scmp.lt.s32.totalorder %s826_s28, %s826_s28 }
  0x42   : > { %p829_p7 = pnand %p827_p5, %p787_p13  ;;  %p836_p2 = por %p835_p0, %p834_p12 }
  0x44   : > { %p830_p9 = pneg %p829_p7 }
  0x46   : > { %p837_p1 = pnand %p836_p2, %p830_p9 }
  0x48   : > { %840 = shalt.err (!%p837_p1)
}
  0x49   : > { %728 = dma.hbm_to_vmem [thread:$0]  (!%p1072_p11), %s1319_s3, 1024, %s1076_s6, [#allocation9], %s983_s15, %s983_s15, %s984_s16  }
  0x4a   : > { %s1131_s14 = sadd.s32 1, %s979_s21   ;;  %s32_s29 = sadd.s32 1, %s975_s20 }
  0x4b   : > { %s29_s17 = ssub.s32 %s979_s21, %s1131_s14  ;;  %p39_p13 = scmp.ne.s32.totalorder %s975_s20, %s971_s19 }
  0x4c   : > { %p30_p6 = scmp.eq.s32.totalorder %s29_s17, 0  ;;  %p40_p10 = scmp.eq.s32.totalorder %s979_s21, 0 }
  0x4d   : > { %p1320_p3 = scmp.eq.s32.totalorder %s1042_s22, 1  ;;  %p742_p7 = scmp.lt.s32.totalorder %s979_s21, 2 }
  0x4e   : > { %s1147_s27 = scalar_select %p30_p6, %s975_s20, %s32_s29  }
  0x4f   : > { %p1141_p5 = por %p1320_p3, %p39_p13  ;;  %p41_p9 = por %p40_p10, %p39_p13 }
  0x50   : > { %s213_s30 = sand.u32 1, %s975_s20   ;;  %s612_s15 = sshll.u32 %s979_s21, 7 }
  0x51   : > { %s1321_s23 = scalar_select %p1141_p5, 1, 0 }
  0x52   : > { %s1150_s6 = sshll.u32 %s213_s30, 3  ;;  %s1156_s8 = scalar_lea.hbm %s1302_s0, %s612_s15 }
  0x53   : > { %s217_s9 = scalar_lea.vmem [#allocation2], %s1150_s6  ;;  %p1161_p11 = pnand %p742_p7, %p41_p9 }
  0x54   : > { %s224_s10 = sshll.u32 %s217_s9, 4  ;;  %s1168_s13 = scalar_lea.hbm %s1303_s1, %s612_s15  ;;  %s1159_s10 = int_to_ptr.vmem [resolvable:$true] %s224_s10 }
  0x55   : > { %s231_s29 = sand.u32 1, %s979_s21   ;;  %s214_s17 = scalar_lea.sflag [#allocation3], %s213_s30 }
  0x56   : > { %s841_s16 = scalar_lea.hbm %s1156_s8, 128  ;;  %p843_p0 = pneg %p1161_p11 }
  0x57   : > { %p842_p12 = scmp.ne.s32.totalorder %s1156_s8, %s841_s16  ;;  %s846_s2 = scalar_lea.hbm %s1302_s0, 256 }
  0x58   : > { %p847_p13 = scmp.lt.u32.totalorder %s1156_s8, %s1302_s0  ;;  %p848_p6 = scmp.lt.u32.totalorder %s846_s2, %s841_s16 }
  0x59   : > { %p844_p2 = pnand %p843_p0, %p842_p12  ;;  %p850_p3 = scmp.lt.u32.totalorder %s841_s16, %s1156_s8 }
  0x5a   : > { %p849_p10 = por %p848_p6, %p847_p13 }
  0x5b   : > { %p845_p1 = pneg %p844_p2 }
  0x5c   : > { %p851_p7 = por %p850_p3, %p849_p10 }
  0x5e   : > { %p852_p9 = pnand %p851_p7, %p845_p1 }
  0x60   : > { %855 = shalt.err (!%p852_p9)
}
  0x61   : > { %s856_s30 = scalar_lea.vmem %s1159_s10, 128  ;;  %s985_s15 = smov [#allocation2]  }
  0x62   : > { %p857_p12 = scmp.ne.s32.totalorder %s1159_s10, %s856_s30  ;;  %s861_s12 = sshll.u32 %s985_s15, 4  ;;  %s862_s12 = int_to_ptr.vmem [resolvable:$false] %s861_s12 }
  0x63   : > { %s863_s3 = scalar_lea.vmem %s862_s12, 256  ;;  %p864_p4 = scmp.lt.s32.totalorder %s1159_s10, %s862_s12 }
  0x64   : > { %p859_p2 = pnand %p857_p12, %p843_p0  ;;  %p865_p13 = scmp.lt.s32.totalorder %s863_s3, %s856_s30 }
  0x66   : > { %p860_p5 = pneg %p859_p2  ;;  %p866_p6 = por %p865_p13, %p864_p4 }
  0x68   : > { %p867_p10 = pnand %p866_p6, %p860_p5 }
  0x6a   : > { %870 = shalt.err (!%p867_p10)
}
  0x6b   : > { %732 = dma.hbm_to_vmem [thread:$0]  (!%p1161_p11), %s1156_s8, 128, %s1159_s10, %s214_s17  }
  0x6c   : > { %s235_s2 = scalar_lea.vmem [#allocation5], %s1150_s6  ;;  %s232_s7 = scalar_lea.sflag [#allocation6], %s231_s29 }
  0x6d   : > { %s242_s16 = sshll.u32 %s235_s2, 4  ;;  %s871_s9 = scalar_lea.hbm %s1168_s13, 128  ;;  %s243_s16 = int_to_ptr.vmem [resolvable:$true] %s242_s16 }
  0x6e   : > { %p872_p4 = scmp.ne.s32.totalorder %s1168_s13, %s871_s9  ;;  %s876_s15 = scalar_lea.hbm %s1303_s1, 256 }
  0x6f   : > { %p877_p3 = scmp.lt.u32.totalorder %s1168_s13, %s1303_s1  ;;  %p878_p7 = scmp.lt.u32.totalorder %s876_s15, %s871_s9 }
  0x70   : > { %p874_p5 = pnand %p872_p4, %p843_p0  ;;  %p880_p12 = scmp.lt.u32.totalorder %s871_s9, %s1168_s13 }
  0x71   : > { %p879_p9 = por %p878_p7, %p877_p3 }
  0x72   : > { %p875_p1 = pneg %p874_p5 }
  0x73   : > { %p881_p2 = por %p880_p12, %p879_p9 }
  0x75   : > { %p882_p13 = pnand %p881_p2, %p875_p1 }
  0x77   : > { %885 = shalt.err (!%p882_p13)
}
  0x78   : > { %s886_s6 = scalar_lea.vmem %s243_s16, 128  ;;  %s986_s8 = smov [#allocation5]  }
  0x79   : > { %p887_p6 = scmp.ne.s32.totalorder %s243_s16, %s886_s6  ;;  %s891_s10 = sshll.u32 %s986_s8, 4  ;;  %s892_s10 = int_to_ptr.vmem [resolvable:$false] %s891_s10 }
  0x7a   : > { %s893_s29 = scalar_lea.vmem %s892_s10, 256  ;;  %p894_p5 = scmp.lt.s32.totalorder %s243_s16, %s892_s10 }
  0x7b   : > { %p889_p10 = pnand %p887_p6, %p843_p0  ;;  %p895_p8 = scmp.lt.s32.totalorder %s893_s29, %s886_s6 }
  0x7d   : > { %p890_p4 = pneg %p889_p10  ;;  %p896_p3 = por %p895_p8, %p894_p5 }
  0x7f   : > { %p897_p7 = pnand %p896_p3, %p890_p4 }
  0x81   : > { %900 = shalt.err (!%p897_p7)
}
  0x82   : > { %735 = dma.hbm_to_vmem [thread:$0]  (!%p1161_p11), %s1168_s13, 128, %s243_s16, %s232_s7  }
  0x83   : > { %p1323_p1 = scmp.ne.s32.totalorder %s1316_s26, 0 }
  0x84   : > { %s1221_s17 = sand.u32 (!%p1323_p1), 1, %s971_s19   ;;  %p1324_p8 = scmp.ne.s32.totalorder (!%p1323_p1), %s1314_s24, 0 }
  0x85   : > { %251 = sbr.rel (%p1323_p1) target bundleno = 401 (0x191), region = 40  ;;  %s1224_s2 = sshll.u32 (!%p1323_p1), %s1221_s17, 3 }
  0x86   : > { %s254_s9 = scalar_lea.sflag (!%p1323_p1), [#allocation3], %s1221_s17  ;;  %s257_s28 = scalar_lea.vmem (!%p1323_p1), [#allocation2], %s1224_s2 }
  0x8c   : > { %946 = dma.done.wait (%p1324_p8), %s254_s9, 128  }
  0x8d   : > { %948 = vsyncadd (%p1324_p8), %s254_s9, 4294967168  ;;  %s262_s26 = sand.u32 1, %s1042_s22   ;;  %s266_s13 = scalar_lea.vmem [#allocation5], %s1224_s2 }
  0x8e   : > { %s263_s11 = scalar_lea.sflag [#allocation6], %s262_s26 }
  0x8f   : > { %950 = dma.done.wait (%p1324_p8), %s263_s11, 128  }
  0x90   : > { %952 = vsyncadd (%p1324_p8), %s263_s11, 4294967168  ;;  %p1325_p11 = scmp.eq.s32.totalorder %s1042_s22, 0 }
  0x92   : > { %954 = dma.done.wait (%p1325_p11), [#allocation6], 1024   ;;  %p1326_p0 = pmov %p1325_p11 }
  0x94   : > { %956 = vsyncadd (%p1326_p0), [#allocation6], 4294966272  ;;  %p1327_p9 = pmov %p1326_p0 }
  0x95   : > { %p1328_p12 = pmov %p1326_p0 }
  0x96   : > { %958 = dma.done.wait (%p1327_p9), [#allocation9], 1024  }
  0x97   : > { %960 = vsyncadd (%p1328_p12), [#allocation9], 4294966272  ;;  %v987_v0 = vmov 0.0|0.0   ;;  %vm988_vm0 = vmmov 0   ;;  %v989_v1 = vmov 0.0   ;;  %v316_v2 = vld [vmem:[#allocation8] sm:$0xff] }
  0x98   : > { %684 = vmatprep.subr.bf16.mxu0 %v987_v0  ;;  %696 = vmatprep.subr.bf16.mxu1 %v987_v0  ;;  %v317_v3 = vld [vmem:[#allocation8 + $0x8] sm:$0xff]  ;;  %v307_v4 = vld [vmem:[#allocation7] sm:$0xff]  ;;  %v318_v7 = vld [vmem:[#allocation8 + $0x10] sm:$0xff]  ;;  %vm324_vm1 = vcmask 523264   ;;  %s625_s7 = sshll.u32 %s1042_s22, 7  ;;  %s305_s30 = scalar_lea.vmem [#allocation10], %s1224_s2 }
  0x99   : > { %662 = vmatprep.mubr.msk.f32.mxu0 %vm988_vm0, %v989_v1  ;;  %681 = vmatprep.mubr.msk.f32.mxu1 %vm988_vm0, %v989_v1  ;;  %v685_v5 = vpack.c.bf16 %v317_v3, %v316_v2  ;;  %v308_v6 = vld [vmem:[#allocation7 + $0x8] sm:$0xff]  ;;  %v319_v8 = vld [vmem:[#allocation8 + $0x18] sm:$0xff]  ;;  %v309_v10 = vld [vmem:[#allocation7 + $0x10] sm:$0xff]  ;;  %s494_s15 = sshll.u32 %s305_s30, 4  ;;  %s1258_s6 = scalar_lea.hbm %s1307_s5, %s625_s7  ;;  %s1260_s15 = int_to_ptr.vmem [resolvable:$true] %s494_s15 }
  0x9a   : > { %v697_v9 = vpack.c.bf16 %v308_v6, %v307_v4  ;;  %v310_v11 = vld [vmem:[#allocation7 + $0x18] sm:$0xff]  ;;  %v688_v12 = vpack.c.bf16 %v319_v8, %v318_v7  ;;  %v320_v14 = vld [vmem:[#allocation8 + $0x20] sm:$0xff]  ;;  %v321_v15 = vld [vmem:[#allocation8 + $0x28] sm:$0xff]  ;;  %s481_s8 = scalar_lea.sflag [#allocation4], %s1221_s17  ;;  %s901_s10 = scalar_lea.vmem %s1260_s15, 128 }
  0x9b   : > { %686 = vmatpush3.bf16.msra.mxu0 %v685_v5  ;;  %v700_v13 = vpack.c.bf16 %v310_v11, %v309_v10  ;;  %v311_v16 = vld [vmem:[#allocation7 + $0x20] sm:$0xff]  ;;  %v312_v17 = vld [vmem:[#allocation7 + $0x28] sm:$0xff]  ;;  %v691_v18 = vpack.c.bf16 %v321_v15, %v320_v14  ;;  %v322_v20 = vld [vmem:[#allocation8 + $0x30] sm:$0xff]  ;;  %p902_p2 = scmp.ne.s32.totalorder %s1260_s15, %s901_s10  ;;  %p1329_p13 = scmp.ne.s32.totalorder %s1321_s23, 0 }
  0x9c   : > { %698 = vmatpush3.bf16.msra.mxu1 %v697_v9  ;;  %687 = vmatprep.subr.bf16.mxu0 %v987_v0  ;;  %v703_v19 = vpack.c.bf16 %v312_v17, %v311_v16  ;;  %v323_v21 = vld [vmem:[#allocation8 + $0x38] sm:$0xff]  ;;  %v313_v22 = vld [vmem:[#allocation7 + $0x30] sm:$0xff]  ;;  %v306_v27 = vld [vmem:[%s257_s28] sm:$0xff]  ;;  %s990_s22 = smov [#allocation10]  }
  0x9d   : > { %699 = vmatprep.subr.bf16.mxu1 %v987_v0  ;;  %v314_v23 = vld [vmem:[#allocation7 + $0x38] sm:$0xff]  ;;  %v694_v24 = vpack.c.bf16 %v323_v21, %v322_v20  ;;  %v623_v30 = vld [vmem:[%s1306_s4] ss:$0 sm:$0xff]  ;;  %p903_p6 = pnand %p902_p2, %p1329_p13  ;;  %s905_s29 = sshll.u32 %s990_s22, 4  ;;  %s906_s29 = int_to_ptr.vmem [resolvable:$false] %s905_s29 }
  0x9e   : > { %v706_v25 = vpack.c.bf16 %v314_v23, %v313_v22  ;;  %v315_v26 = vld [vmem:[%s266_s13] sm:$0xff]  ;;  %s907_s2 = scalar_lea.vmem %s906_s29, 256  ;;  %p908_p4 = scmp.lt.s32.totalorder %s1260_s15, %s906_s29 }
  0x9f   : > { %689 = vmatpush3.bf16.msra.mxu0 %v688_v12  ;;  %p904_p10 = pneg %p903_p6  ;;  %p909_p5 = scmp.lt.s32.totalorder %s907_s2, %s901_s10 }
  0xa0   : > { %701 = vmatpush3.bf16.msra.mxu1 %v700_v13  ;;  %690 = vmatprep.subr.bf16.mxu0 %v987_v0 }
  0xa1   : > { %702 = vmatprep.subr.bf16.mxu1 %v987_v0  ;;  %p910_p3 = por %p909_p5, %p908_p4 }
  0xa3   : > { %692 = vmatpush3.bf16.msra.mxu0 %v691_v18  ;;  %p911_p7 = pnand %p910_p3, %p904_p10 }
  0xa4   : > { %704 = vmatpush3.bf16.msra.mxu1 %v703_v19  ;;  %693 = vmatprep.subr.bf16.mxu0 %v987_v0 }
  0xa5   : > { %705 = vmatprep.subr.bf16.mxu1 %v987_v0 }
  0xa7   : > { %695 = vmatpush3.bf16.msra.mxu0 %v694_v24 }
  0xa8   : > { %707 = vmatpush3.bf16.msra.mxu1 %v706_v25 }
  0xaa   : > { %663 = vmatmul.mubr.msk.f32.vlgmr.msra.gmra.mrb[0].mxu0 %vm324_vm1, %v315_v26 }
  0xab   : > { %682 = vmatmul.mubr.msk.f32.vlgmr.msra.gmra.mrb[0].mxu1 %vm324_vm1, %v306_v27 }
 0x17d   : > { %v394_v28 = vpop.f32.mrb[0].mxu0 }
 0x17e   : > { %v467_v29 = vpop.f32.mrb[0].mxu1  ;;  %v664_v31 = vpop.f32.mrb[1].mxu0 }
 0x17f   : > { %v468_v32 = vadd.f32 %v467_v29, %v394_v28  ;;  %v683_v33 = vpop.f32.mrb[1].mxu1 }
 0x181   : > { %v478_v34 = vadd.f32 %v623_v30, %v468_v32 }
 0x183   : > { %479 = vst [vmem:[%s305_s30] sm:$0xff] %v478_v34 }
 0x184   : > { %914 = shalt.err (!%p911_p7)
}
 0x185   : > { %s915_s17 = scalar_lea.hbm %s1258_s6, 128  ;;  %s919_s26 = scalar_lea.hbm %s1307_s5, 256 }
 0x186   : > { %p916_p1 = scmp.ne.s32.totalorder %s1258_s6, %s915_s17  ;;  %p920_p0 = scmp.lt.u32.totalorder %s1258_s6, %s1307_s5 }
 0x187   : > { %p921_p9 = scmp.lt.u32.totalorder %s919_s26, %s915_s17  ;;  %p923_p2 = scmp.lt.u32.totalorder %s915_s17, %s1258_s6 }
 0x188   : > { %p917_p8 = pnand %p916_p1, %p1329_p13 }
 0x189   : > { %p922_p12 = por %p921_p9, %p920_p0 }
 0x18a   : > { %p918_p11 = pneg %p917_p8 }
 0x18b   : > { %p924_p6 = por %p923_p2, %p922_p12 }
 0x18d   : > { %p925_p10 = pnand %p924_p6, %p918_p11 }
 0x18f   : > { %928 = shalt.err (!%p925_p10)
}
 0x190   : > { %720 = dma.vmem_to_hbm [thread:$0]  (%p1329_p13), %s1260_s15, 128, %s1258_s6, %s481_s8  }
 0x191 PF: > { %s506_s24 = sand.u32 1, %s967_s18   ;;  %p1330_p4 = scmp.ne.s32.totalorder %s1315_s25, 0 }
 0x192   : > { %p1331_p5 = scmp.ge.s32.totalorder %s979_s21, 2  ;;  %s507_s16 = scalar_lea.sflag [#allocation4], %s506_s24 }
 0x194   : > { %p737_p3 = pnand %p1331_p5, %p1330_p4 }
 0x196   : > { %962 = dma.done.wait (!%p737_p3), %s507_s16, 128  }
 0x197   : > { %964 = vsyncadd (!%p737_p3), %s507_s16, 4294967168  ;;  %p22_p7 = scmp.ge.s32.totalorder %s1131_s14, 4   ;;  %s1332_s18 = smov %s971_s19 }
 0x198   : > { %s1333_s19 = smov %s975_s20  ;;  %s1334_s20 = smov %s1147_s27 }
 0x199   : > { %s1335_s21 = smov %s1131_s14  ;;  %24 = sbr.rel (!%p22_p7) target bundleno = 11 (0xb), region = 106 }
 0x1a0   :  { %512 = vsyncpa [#allocation3], 1 }
 0x1a1   :  { %514 = vsyncpa [#allocation3 + $0x1], 1 }
 0x1a2   :  { %515 = vsyncpa [#allocation6], 1 }
 0x1a3   :  { %517 = vsyncpa [#allocation6 + $0x1], 1 }
 0x1a4   :  { %518 = vsyncpa [#allocation9], 1 }
 0x1a5   :  { %519 = vsyncpa [#allocation4], 1 }
 0x1a6   :  { %521 = vsyncpa [#allocation4 + $0x1], 1 }

</bundles_post_ra>
